<compile_context>
chip_gen: v7x
topology: tpu7x:2x2x1
jax: 0.10.0
libtpu: 0.0.40
codegen_flags: <defaults>
</compile_context>

<pallas_src>
import functools
import math

import jax
import jax.numpy as jnp
from jax import lax
from jax.experimental import pallas as pl
from jax.experimental.pallas import tpu as pltpu


def _vmem_limit_bytes():
    """Chip-aware scoped-VMEM limit (128 MiB phys on v5e/v6e, 64 MiB on v7x)."""
    try:
        cap = int(pltpu.get_tpu_info().vmem_capacity_bytes)
    except Exception:
        cap = 64 * 1024 * 1024  # conservative fallback: safe on every generation
    return int(min(96 * 1024 * 1024, (cap * 3) // 4))


_VMEM_LIMIT = _vmem_limit_bytes()


def _row_tile(M, bytes_per_row, budget_bytes, target=1024):
    """Row tile for the projection matmuls: as large as the VMEM budget allows
    (projections are HBM-bound), multiple of 8 sublanes."""
    if M <= 8 or M % 8 != 0:
        # TODO(synk): pad ragged M to a multiple of 8 instead of disabling tiling.
        return M
    fit = max(8, budget_bytes // (2 * max(bytes_per_row, 1)))  # 2x: double-buffer
    tm = int(min(target, M, fit))
    tm -= tm % 8
    return max(tm, 8)


# ----------------------------- projection kernel -----------------------------

def _multi_proj_kernel(*refs, n_in, groups):
    """refs = (x_0..x_{n-1}, w_0..w_{n-1}, o_0..o_{len(groups)-1}).
    Output g is the lane-concatenation of x_i @ w_i over its group, so each
    grid step issues one lane-dense output store per group instead of one
    narrow (d_k-wide) store per projection."""
    x_refs = refs[:n_in]
    w_refs = refs[n_in:2 * n_in]
    o_refs = refs[2 * n_in:]
    idx = 0
    for o_ref, g in zip(o_refs, groups):
        ys = [jnp.dot(x_refs[idx + j][...], w_refs[idx + j][...],
                      preferred_element_type=jnp.float32) for j in range(g)]
        idx += g
        y = ys[0] if g == 1 else jnp.concatenate(ys, axis=-1)
        o_ref[...] = y.astype(o_ref.dtype)


def multi_projection(xs, ws, groups):
    """xs: tuple of (M, d_model) activations, ws: matching pre-transposed
    (d_model, n_i) weights, groups: lane-concatenation structure of the
    outputs, e.g. groups=(1, 2) -> (x0@w0, concat(x1@w1, x2@w2))."""
    n_in = len(xs)
    assert len(ws) == n_in and sum(groups) == n_in
    M, K = xs[0].shape
    for x in xs:
        assert x.shape == (M, K)
    out_dtype = xs[0].dtype
    itemsize = jnp.dtype(out_dtype).itemsize

    widths, idx = [], 0
    for g in groups:
        widths.append(sum(int(ws[idx + j].shape[1]) for j in range(g)))
        idx += g

    w_bytes = itemsize * sum(int(w.size) for w in ws)
    bytes_per_row = itemsize * (n_in * K + sum(widths))
    budget = max(_VMEM_LIMIT - 2 * w_bytes, 1 << 20)
    tm = _row_tile(M, bytes_per_row, budget)

    x_spec = pl.BlockSpec((tm, K), lambda m: (m, 0))
    w_specs = [pl.BlockSpec(w.shape, lambda m: (0, 0)) for w in ws]
    out_specs = tuple(pl.BlockSpec((tm, w_), lambda m: (m, 0)) for w_ in widths)
    out_shape = tuple(jax.ShapeDtypeStruct((M, w_), out_dtype) for w_ in widths)

    cost = pl.CostEstimate(
        flops=int(2 * M * K * sum(widths)),
        transcendentals=0,
        bytes_accessed=int(itemsize * (n_in * M * K
                                       + sum(int(w.size) for w in ws)
                                       + M * sum(widths))),
    )
    res = pl.pallas_call(
        functools.partial(_multi_proj_kernel, n_in=n_in, groups=tuple(groups)),
        out_shape=out_shape,
        grid=(pl.cdiv(M, tm),),
        in_specs=[x_spec] * n_in + w_specs,
        out_specs=out_specs,
        compiler_params=pltpu.CompilerParams(
            dimension_semantics=("parallel",),
            vmem_limit_bytes=_VMEM_LIMIT),
        cost_estimate=cost,
    )(*xs, *ws)
    if not isinstance(res, (tuple, list)):
        res = (res,)
    return tuple(res)


# ---------------- fused attention (all heads) + W_o projection ---------------

def _attn_out_kernel(q_ref, kv_ref, wo_ref, attn_ref, out_ref, *,
                     n_heads, d_k, inv_scale):
    # Blocks: q  (1, tq, H, d_k)    -- head-folded layout, no HBM transpose
    #         kv (1, Sk, H, 2*d_k)  -- [K | V] concatenated along lanes
    #         wo (H*d_k, d_model)   -- resident across the grid
    # Outputs: attn (1, H, tq, Sk), out (1, tq, d_model).
    q = q_ref[0] * inv_scale      # scale folded into Q (d_k muls << Sk divides)
    kv = kv_ref[0]

    ctx_parts = []
    for h in range(n_heads):                       # static unroll over heads
        qh = q[:, h, :]                            # (tq, d_k)
        kh = kv[:, h, :d_k]                        # (Sk, d_k)
        vh = kv[:, h, d_k:]                        # (Sk, d_k)

        # Scores: contract the shared d_k axis directly (no K transpose / XLU).
        s = lax.dot_general(qh, kh, (((1,), (1,)), ((), ())),
                            preferred_element_type=jnp.float32)   # (tq, Sk)

        # Numerically-stable softmax; exact division so attn rows sum to 1.
        s = s - jnp.max(s, axis=-1, keepdims=True)
        p = jnp.exp(s)
        p = p / jnp.sum(p, axis=-1, keepdims=True)

        attn_ref[0, h] = p.astype(attn_ref.dtype)
        ctx_parts.append(jnp.dot(p.astype(vh.dtype), vh,
                                 preferred_element_type=jnp.float32))  # (tq, d_k)

    # group_heads + W_o as ONE MXU pass with K = H*d_k = d_model: concatenate
    # the per-head contexts along lanes (h-major, exactly group_heads' layout)
    # and do a single contraction — no (H, tq, d_model) intermediate.
    ctx = jnp.concatenate(ctx_parts, axis=-1)       # (tq, H*d_k)
    out_ref[0] = jnp.dot(ctx.astype(wo_ref.dtype), wo_ref[...],
                         preferred_element_type=jnp.float32).astype(out_ref.dtype)


def _q_tile(Sq):
    for t in (512, 256, 128):
        if Sq > t and Sq % t == 0:
            return t
    return Sq


def attention_and_output(q_f, kv_f, wo2d, inv_scale, out_dtype):
    """q_f: (B, Sq, H, d_k) head-folded queries; kv_f: (B, Sk, H, 2*d_k) folded
    [K|V]; wo2d: (H*d_k, d_model). Returns (attn, out)."""
    B, Sq, H, d_k = q_f.shape
    Sk = kv_f.shape[1]
    d_model = wo2d.shape[1]
    tq = _q_tile(Sq)
    grid = (B, Sq // tq)

    itemsize = jnp.dtype(q_f.dtype).itemsize
    cost = pl.CostEstimate(
        flops=int(B * H * (2 * Sq * Sk * d_k + 2 * Sq * Sk * d_k)
                  + B * 2 * Sq * (H * d_k) * d_model),
        transcendentals=int(B * H * Sq * Sk),
        bytes_accessed=int(itemsize * (int(q_f.size) + int(kv_f.size)
                                       + B * int(wo2d.size)
                                       + B * H * Sq * Sk + B * Sq * d_model)),
    )
    attn, out = pl.pallas_call(
        functools.partial(_attn_out_kernel, n_heads=H, d_k=d_k,
                          inv_scale=inv_scale),
        out_shape=(
            jax.ShapeDtypeStruct((B, H, Sq, Sk), q_f.dtype),
            jax.ShapeDtypeStruct((B, Sq, d_model), out_dtype),
        ),
        grid=grid,
        in_specs=[
            pl.BlockSpec((1, tq, H, d_k), lambda b, i: (b, i, 0, 0)),
            pl.BlockSpec((1, Sk, H, 2 * d_k), lambda b, i: (b, 0, 0, 0)),
            pl.BlockSpec((H * d_k, d_model), lambda b, i: (0, 0)),
        ],
        out_specs=(
            pl.BlockSpec((1, H, tq, Sk), lambda b, i: (b, 0, i, 0)),
            pl.BlockSpec((1, tq, d_model), lambda b, i: (b, i, 0)),
        ),
        compiler_params=pltpu.CompilerParams(
            dimension_semantics=("parallel", "parallel"),
            vmem_limit_bytes=_VMEM_LIMIT),
        cost_estimate=cost,
    )(q_f, kv_f, wo2d)
    return attn, out


# ----------------------------- multi-head attention --------------------------

def multi_head_attention(query, key, value, params, n_heads, mask=None):
    """query/key/value: (B, L, d_model). Returns (out, attn) exactly like the
    PyTorch module (including its L // n_heads sequence folding)."""
    if mask is not None:
        # TODO(synk): masked_fill(mask == 0, -inf) before softmax not implemented.
        raise NotImplementedError("mask is not supported in the Pallas kernel")

    wq, wk, wv, wo = params
    B, Lq, d_model = query.shape
    Lk = key.shape[1]
    Lv = value.shape[1]
    H = n_heads
    d_k = d_model // H
    assert Lq % H == 0 and Lk % H == 0 and Lv % H == 0
    Sq, Sk, Sv = Lq // H, Lk // H, Lv // H
    assert Sk == Sv, "key/value lengths must match after the head folding"

    # One-time weight layout plumbing (outside the hot loops).
    wq_t, wk_t, wv_t = wq.T, wk.T, wv.T            # (d_model, d_k)
    wo2d = wo.T                                    # (H*d_k, d_model)

    q2d = query.reshape(B * Lq, d_model)
    k2d = key.reshape(B * Lk, d_model)
    v2d = value.reshape(B * Lv, d_model)

    if Lq == Lk == Lv:
        # One fused, row-tiled call: Q plus a lane-concatenated [K|V] output.
        Q2d, KV2d = multi_projection((q2d, k2d, v2d), (wq_t, wk_t, wv_t),
                                     groups=(1, 2))
    else:
        (Q2d,) = multi_projection((q2d,), (wq_t,), groups=(1,))
        (KV2d,) = multi_projection((k2d, v2d), (wk_t, wv_t), groups=(2,))

    # split_heads folding is a pure reshape view (no transpose, no HBM traffic):
    # Q2d[b*Lq + s*H + h, :] == Q_heads[b, h, s, :].
    q_f = Q2d.reshape(B, Sq, H, d_k)               # (B, Sq, H, d_k)
    kv_f = KV2d.reshape(B, Sk, H, 2 * d_k)         # (B, Sk, H, 2*d_k)

    inv_scale = 1.0 / math.sqrt(d_k)
    attn, out = attention_and_output(q_f, kv_f, wo2d, inv_scale, query.dtype)
    return out, attn


# ---------------------------------- reference ---------------------------------

def _reference_mha(query, key, value, params, n_heads):
    wq, wk, wv, wo = params
    B, Lq, d_model = query.shape
    H = n_heads
    d_k = d_model // H
    Q = query @ wq.T
    K = key @ wk.T
    V = value @ wv.T

    def split(x):
        return x.reshape(x.shape[0], -1, H, d_k).transpose(0, 2, 1, 3)

    Qh, Kh, Vh = split(Q), split(K), split(V)
    s = jnp.einsum('bhqd,bhkd->bhqk', Qh, Kh) / math.sqrt(d_k)
    p = jax.nn.softmax(s, axis=-1)
    ctx = jnp.einsum('bhqk,bhkd->bhqd', p, Vh)
    x = ctx.transpose(0, 2, 1, 3).reshape(B, -1, H * d_k)
    return x @ wo.T, p


# ------------------------------------ main -------------------------------------

if __name__ == "__main__":
    B, L, d_model, n_heads = 2, 8, 32, 4
    d_k = d_model // n_heads

    root = jax.random.PRNGKey(0)
    k1, k2, k3, k4, k5, k6, k7 = jax.random.split(root, 7)

    def init_linear(k, out_f, in_f):
        # Deterministic synthetic init, same scale as nn.Linear's default bound.
        bound = 1.0 / math.sqrt(in_f)
        return jax.random.uniform(k, (out_f, in_f), jnp.float32, -bound, bound)

    wq = init_linear(k1, d_k, d_model)             # (d_k, d_model)
    wk = init_linear(k2, d_k, d_model)             # (d_k, d_model)
    wv = init_linear(k3, d_k, d_model)             # (d_k, d_model)
    wo = init_linear(k4, d_model, n_heads * d_k)   # (d_model, d_model)

    query = jax.random.normal(k5, (B, L, d_model), jnp.float32)
    key_in = jax.random.normal(k6, (B, L, d_model), jnp.float32)
    value = jax.random.normal(k7, (B, L, d_model), jnp.float32)

    params = (wq, wk, wv, wo)
    out, attn = multi_head_attention(query, key_in, value, params, n_heads)
    jax.block_until_ready((out, attn))

    assert out.shape == (B, L // n_heads, d_model)
    assert attn.shape == (B, n_heads, L // n_heads, L // n_heads)

    # Numerical check against a pure-JAX reference (softmax uses exact division
    # in the kernel, so only MXU f32 matmul precision differences remain).
    ref_out, ref_attn = _reference_mha(query, key_in, value, params, n_heads)
    assert jnp.allclose(out, ref_out, rtol=2e-2, atol=2e-2)
    assert jnp.allclose(attn, ref_attn, rtol=2e-2, atol=2e-2)

    print("KERNEL_OK")
</pallas_src>

<mosaic_0001>
module attributes {stable_mosaic.version = 11 : i64} {
  func.func @_multi_proj_kernel(%arg0: i32, %arg1: memref<16x32xf32, #tpu.memory_space<vmem>>, %arg2: memref<16x32xf32, #tpu.memory_space<vmem>>, %arg3: memref<16x32xf32, #tpu.memory_space<vmem>>, %arg4: memref<32x8xf32, #tpu.memory_space<vmem>>, %arg5: memref<32x8xf32, #tpu.memory_space<vmem>>, %arg6: memref<32x8xf32, #tpu.memory_space<vmem>>, %arg7: memref<16x8xf32, #tpu.memory_space<vmem>>, %arg8: memref<16x16xf32, #tpu.memory_space<vmem>>) attributes {dimension_semantics = [#tpu.dimension_semantics<parallel>], iteration_bounds = array<i64: 1>, scalar_prefetch = 0 : i64, scratch_operands = 0 : i64, tpu.core_type = #tpu.core_type<tc>, window_params = [{transform_indices = @transform_0, window_bounds = array<i64: 16, 32>}, {transform_indices = @transform_1, window_bounds = array<i64: 16, 32>}, {transform_indices = @transform_2, window_bounds = array<i64: 16, 32>}, {pipeline_mode = #tpu.pipeline_mode<synchronous>, transform_indices = @transform_3, window_bounds = array<i64: 32, 8>}, {pipeline_mode = #tpu.pipeline_mode<synchronous>, transform_indices = @transform_4, window_bounds = array<i64: 32, 8>}, {pipeline_mode = #tpu.pipeline_mode<synchronous>, transform_indices = @transform_5, window_bounds = array<i64: 32, 8>}, {transform_indices = @transform_6, window_bounds = array<i64: 16, 8>}, {transform_indices = @transform_7, window_bounds = array<i64: 16, 16>}]} {
    %c0 = arith.constant 0 : index
    %c0_0 = arith.constant 0 : index
    %0 = vector.load %arg1[%c0, %c0_0] : memref<16x32xf32, #tpu.memory_space<vmem>>, vector<16x32xf32>
    %c0_1 = arith.constant 0 : index
    %c0_2 = arith.constant 0 : index
    %1 = vector.load %arg4[%c0_1, %c0_2] : memref<32x8xf32, #tpu.memory_space<vmem>>, vector<32x8xf32>
    %cst = arith.constant dense<0.000000e+00> : vector<16x8xf32>
    %2 = tpu.matmul %0, %1, %cst {dimension_numbers = #tpu.dot_dimension_numbers<[1], [0], [0], [1], [0, 0, 1, 1], [], []>} : vector<16x32xf32>, vector<32x8xf32>, vector<16x8xf32> -> vector<16x8xf32>
    %c0_3 = arith.constant 0 : index
    %c0_4 = arith.constant 0 : index
    %3 = vector.load %arg7[%c0_3, %c0_4] : memref<16x8xf32, #tpu.memory_space<vmem>>, vector<16x8xf32>
    tpu.vector_store %arg7[%c0_3, %c0_4], %2 {strides = array<i32>} : memref<16x8xf32, #tpu.memory_space<vmem>>, vector<16x8xf32>,
    %c0_5 = arith.constant 0 : index
    %c0_6 = arith.constant 0 : index
    %4 = vector.load %arg2[%c0_5, %c0_6] : memref<16x32xf32, #tpu.memory_space<vmem>>, vector<16x32xf32>
    %c0_7 = arith.constant 0 : index
    %c0_8 = arith.constant 0 : index
    %5 = vector.load %arg5[%c0_7, %c0_8] : memref<32x8xf32, #tpu.memory_space<vmem>>, vector<32x8xf32>
    %cst_9 = arith.constant dense<0.000000e+00> : vector<16x8xf32>
    %6 = tpu.matmul %4, %5, %cst_9 {dimension_numbers = #tpu.dot_dimension_numbers<[1], [0], [0], [1], [0, 0, 1, 1], [], []>} : vector<16x32xf32>, vector<32x8xf32>, vector<16x8xf32> -> vector<16x8xf32>
    %c0_10 = arith.constant 0 : index
    %c0_11 = arith.constant 0 : index
    %7 = vector.load %arg3[%c0_10, %c0_11] : memref<16x32xf32, #tpu.memory_space<vmem>>, vector<16x32xf32>
    %c0_12 = arith.constant 0 : index
    %c0_13 = arith.constant 0 : index
    %8 = vector.load %arg6[%c0_12, %c0_13] : memref<32x8xf32, #tpu.memory_space<vmem>>, vector<32x8xf32>
    %cst_14 = arith.constant dense<0.000000e+00> : vector<16x8xf32>
    %9 = tpu.matmul %7, %8, %cst_14 {dimension_numbers = #tpu.dot_dimension_numbers<[1], [0], [0], [1], [0, 0, 1, 1], [], []>} : vector<16x32xf32>, vector<32x8xf32>, vector<16x8xf32> -> vector<16x8xf32>
    %10 = tpu.concatenate %6, %9 in 1 : vector<16x8xf32>, vector<16x8xf32> -> vector<16x16xf32>
    %c0_15 = arith.constant 0 : index
    %c0_16 = arith.constant 0 : index
    %11 = vector.load %arg8[%c0_15, %c0_16] : memref<16x16xf32, #tpu.memory_space<vmem>>, vector<16x16xf32>
    tpu.vector_store %arg8[%c0_15, %c0_16], %10 {strides = array<i32>} : memref<16x16xf32, #tpu.memory_space<vmem>>, vector<16x16xf32>,
    return
  }
  func.func @transform_0(%arg0: i32) -> (i32, i32) {
    %c0_i32 = arith.constant 0 : i32
    %c0_i32_0 = arith.constant 0 : i32
    return %arg0, %c0_i32 : i32, i32
  }
  func.func @transform_1(%arg0: i32) -> (i32, i32) {
    %c0_i32 = arith.constant 0 : i32
    %c0_i32_0 = arith.constant 0 : i32
    return %arg0, %c0_i32 : i32, i32
  }
  func.func @transform_2(%arg0: i32) -> (i32, i32) {
    %c0_i32 = arith.constant 0 : i32
    %c0_i32_0 = arith.constant 0 : i32
    return %arg0, %c0_i32 : i32, i32
  }
  func.func @transform_3(%arg0: i32) -> (i32, i32) {
    %c0_i32 = arith.constant 0 : i32
    %c0_i32_0 = arith.constant 0 : i32
    %c0_i32_1 = arith.constant 0 : i32
    return %c0_i32, %c0_i32_0 : i32, i32
  }
  func.func @transform_4(%arg0: i32) -> (i32, i32) {
    %c0_i32 = arith.constant 0 : i32
    %c0_i32_0 = arith.constant 0 : i32
    %c0_i32_1 = arith.constant 0 : i32
    return %c0_i32, %c0_i32_0 : i32, i32
  }
  func.func @transform_5(%arg0: i32) -> (i32, i32) {
    %c0_i32 = arith.constant 0 : i32
    %c0_i32_0 = arith.constant 0 : i32
    %c0_i32_1 = arith.constant 0 : i32
    return %c0_i32, %c0_i32_0 : i32, i32
  }
  func.func @transform_6(%arg0: i32) -> (i32, i32) {
    %c0_i32 = arith.constant 0 : i32
    %c0_i32_0 = arith.constant 0 : i32
    return %arg0, %c0_i32 : i32, i32
  }
  func.func @transform_7(%arg0: i32) -> (i32, i32) {
    %c0_i32 = arith.constant 0 : i32
    %c0_i32_0 = arith.constant 0 : i32
    return %arg0, %c0_i32 : i32, i32
  }
}

</mosaic_0001>

<bundles_post_ra>
// kernel: tpu_custom_call.1
= control target key start
LH: loop header
LB: loop body
LE: loop exit
PB: predicated region body
PF: predicated region fallthrough
CT: control target
= control target key end

     0   :  { %vm32_vm0 = vcmask 261120   ;;  %s560_s0 = inlined_call_operand.vmem [shape: f32[16,32], index: 0, kind: input, shape index: {}]   ;;  %s561_s1 = inlined_call_operand.vmem [shape: f32[16,32], index: 1, kind: input, shape index: {}]   ;;  %s562_s2 = inlined_call_operand.vmem [shape: f32[16,32], index: 2, kind: input, shape index: {}]   ;;  %s563_s3 = inlined_call_operand.vmem [shape: f32[32,8], index: 3, kind: input, shape index: {}]   ;;  %s564_s4 = inlined_call_operand.vmem [shape: f32[32,8], index: 4, kind: input, shape index: {}]   ;;  %s565_s5 = inlined_call_operand.vmem [shape: f32[32,8], index: 5, kind: input, shape index: {}]   ;;  %s566_s6 = inlined_call_operand.vmem [shape: f32[16,8], index: 6, kind: output, shape index: {0}]   ;;  %s567_s7 = inlined_call_operand.hbm [shape: f32[16,16], index: 7, kind: output, shape index: {1}]  }
   0x1   :  { %v28_v0 = vld [vmem:[%s563_s3] sm:$0xff]  ;;  %v29_v1 = vld [vmem:[%s563_s3 + $0x8] sm:$0xff]  ;;  %v30_v2 = vld [vmem:[%s563_s3 + $0x10] sm:$0xff] }
   0x2   :  { %v381_v3 = vpack.c.bf16 %v29_v1, %v28_v0  ;;  %v31_v4 = vld [vmem:[%s563_s3 + $0x18] sm:$0xff]  ;;  %v26_v5 = vld [vmem:[%s560_s0] sm:$0xff]  ;;  %v207_v8 = vld [vmem:[%s565_s5 + $0x8] sm:$0xff] }
   0x3   :  { %v385_v6 = vpack.c.bf16 %v31_v4, %v30_v2  ;;  %356 = vmatprep.mubr.msk.f32.mxu0 %vm32_vm0, %v26_v5  ;;  %v206_v7 = vld [vmem:[%s565_s5] sm:$0xff]  ;;  %v120_v10 = vld [vmem:[%s564_s4 + $0x8] sm:$0xff]  ;;  %v121_v11 = vld [vmem:[%s564_s4 + $0x10] sm:$0xff] }
   0x4   :  { %382 = vmatprep.subr.bf16.mxu0 %v381_v3  ;;  %v119_v9 = vld [vmem:[%s564_s4] sm:$0xff]  ;;  %v397_v12 = vpack.c.bf16 %v207_v8, %v206_v7  ;;  %v122_v14 = vld [vmem:[%s564_s4 + $0x18] sm:$0xff]  ;;  %v208_v16 = vld [vmem:[%s565_s5 + $0x10] sm:$0xff] }
   0x5   :  { %384 = vmatpush3.bf16.msra.mxu0 %v381_v3  ;;  %v389_v13 = vpack.c.bf16 %v120_v10, %v119_v9  ;;  %v117_v15 = vld [vmem:[%s561_s1] sm:$0xff]  ;;  %v209_v17 = vld [vmem:[%s565_s5 + $0x18] sm:$0xff]  ;;  %v393_v18 = vpack.c.bf16 %v122_v14, %v121_v11 }
   0x6   :  { %386 = vmatprep.subr.bf16.mxu0 %v385_v6  ;;  %367 = vmatprep.mubr.msk.f32.mxu1 %vm32_vm0, %v117_v15 }
   0x7   :  { %13 = vsyncpa [#allocation3], 0  ;;  %390 = vmatprep.subr.bf16.mxu1 %v389_v13  ;;  %v27_v19 = vld [vmem:[%s560_s0 + $0x8] sm:$0xff]  ;;  %v401_v20 = vpack.c.bf16 %v209_v17, %v208_v16  ;;  %v204_v21 = vld [vmem:[%s562_s2] sm:$0xff]  ;;  %vm114_vm1 = vcmask 64512   ;;  %vm301_vm2 = vcmask 130048  }
   0x8   :  { %392 = vmatpush3.bf16.msra.mxu1 %v389_v13  ;;  %v118_v22 = vld [vmem:[%s561_s1 + $0x8] sm:$0xff]  ;;  %s433_s13 = smov [#allocation2]  }
   0x9   :  { %388 = vmatpush3.bf16.msra.mxu0 %v385_v6  ;;  %394 = vmatprep.subr.bf16.mxu1 %v393_v18  ;;  %v205_v23 = vld [vmem:[%s562_s2 + $0x8] sm:$0xff]  ;;  %s432_s2 = smov 8   ;;  %s311_s14 = sshll.u32 %s433_s13, 4  ;;  %s312_s14 = int_to_ptr.vmem [resolvable:$true] %s311_s14 }
   0xa   :  { %398 = vmatprep.subr.bf16.mxu0 %v397_v12  ;;  %p413_p1 = scmp.lt.s32.totalorder %s312_s14, %s312_s14 }
   0xc   :  { %357 = vmatmul.mubr.msk.f32.vlgmr.msra.gmra.mrb[0].mxu0 %vm32_vm0, %v27_v19  ;;  %396 = vmatpush3.bf16.msra.mxu1 %v393_v18 }
   0xd   :  { %400 = vmatpush3.bf16.msra.mxu0 %v397_v12  ;;  %378 = vmatprep.mubr.msk.f32.mxu0 %vm32_vm0, %v204_v21 }
   0xe   :  { %402 = vmatprep.subr.bf16.mxu0 %v401_v20 }
   0xf   :  { %368 = vmatmul.mubr.msk.f32.vlgmr.msra.gmra.mrb[0].mxu1 %vm32_vm0, %v118_v22 }
  0x11   :  { %404 = vmatpush3.bf16.msra.mxu0 %v401_v20 }
  0x14   :  { %379 = vmatmul.mubr.msk.f32.vlgmr.msra.gmra.mrb[2].mxu0 %vm32_vm0, %v205_v23 }
  0xdf   :  { %v358_v24 = vpop.f32.mrb[0].mxu0 }
  0xe0   :  { %116 = vst.msk [vmem:[%s566_s6 + $0x8] sm:$0xff] %vm114_vm1, %v358_v24  ;;  %v105_v25 = vpop.f32.mrb[1].mxu0 }
  0xe1   :  { %115 = vst.msk [vmem:[%s566_s6] sm:$0xff] %vm114_vm1, %v105_v25  ;;  %s408_s6 = scalar_lea.vmem %s312_s14, 256 }
  0xe2   :  { %v369_v26 = vpop.f32.mrb[0].mxu1  ;;  %p409_p0 = scmp.ne.s32.totalorder %s312_s14, %s408_s6  ;;  %p414_p2 = scmp.lt.s32.totalorder %s408_s6, %s408_s6 }
  0xe3   :  { %v195_v27 = vpop.f32.mrb[1].mxu1 }
  0xe4   :  { %p415_p3 = por %p414_p2, %p413_p1 }
  0xe6   :  { %p416_p4 = pnand %p415_p3, %p409_p0 }
  0xe7   :  { %v380_v28 = vpop.f32.mrb[2].mxu0 }
  0xe8   :  { %v282_v29 = vpop.f32.mrb[3].mxu0 }
  0xe9   :  { %293 = vrot.lane.b32.xlu0 %v282_v29, %s432_s2 }
  0xed   :  { %295 = vrot.lane.b32.xlu0 %v380_v28, %s432_s2 }
 0x15b   :  { %v294_v30 = vpop.permute.xlu0 %293 }
 0x15c   :  { %v299_v31 = vsel %vm114_vm1, %v195_v27, %v294_v30 }
 0x15d   :  { %302 = vst.msk [vmem:[#allocation2] sm:$0xff] %vm301_vm2, %v299_v31 }
 0x15f   :  { %v296_v32 = vpop.permute.xlu0 %295 }
 0x160   :  { %v300_v33 = vsel %vm114_vm1, %v369_v26, %v296_v32 }
 0x161   :  { %303 = vst.msk [vmem:[#allocation2 + $0x8] sm:$0xff] %vm301_vm2, %v300_v33 }
 0x162   :  { %419 = shalt.err (!%p416_p4)
}
 0x163   :  { %s420_s3 = scalar_lea.hbm %s567_s7, 256 }
 0x164   :  { %p421_p5 = scmp.ne.s32.totalorder %s567_s7, %s420_s3  ;;  %p424_p6 = scmp.lt.u32.totalorder %s420_s3, %s567_s7 }
 0x166   :  { %p426_p7 = pnand %p424_p6, %p421_p5 }
 0x168   :  { %429 = shalt.err (!%p426_p7)
}
 0x169   :  { %s434_s21 = smov 128  }
 0x16a   :  { %317 = dma.vmem_to_hbm [thread:$0]  %s312_s14, 256, %s567_s7, [#allocation3], %s434_s21, %s434_s21, %s432_s2  }
 0x16b   :  { %430 = dma.done.wait [#allocation3], 256  }
 0x16c   :  { %431 = vsyncadd [#allocation3], 4294967040 }
 0x16d   :  { %323 = vsyncpa [#allocation3], 1 }

</bundles_post_ra>
